<compile_context>
chip_gen: v7x
topology: tpu7x:2x2x1
jax: 0.10.0
libtpu: 0.0.40
codegen_flags: <defaults>
</compile_context>

<pallas_src>
import functools

import jax
import jax.numpy as jnp
from jax import lax
from jax.experimental import pallas as pl
from jax.experimental.pallas import tpu as pltpu

# Small, runnable shapes consistent with the module structure
# (real model: ntoken=21, ninp=320, nhid=1280, nlayers=3).
NTOKEN = 21
NINP = 32
NHID = 64
NLAYERS = 3
SEQ_LEN = 8
BATCH = 2


def _lstm_chunk_kernel(gx_ref, whh_ref, out_ref, h_last_ref, c_last_ref,
                       h_sc, c_sc, *, t_chunk):
    """LSTM recurrence over one time-chunk of one direction.

    grid = (2 directions ["parallel"], num_chunks ["arbitrary"]).
    gx_ref:   (t_chunk, B, 4H)  precomputed x @ W_ih + b for this chunk
    whh_ref:  (H, 4H)           recurrent weights (constant block index)
    out_ref:  (t_chunk, B, H)   per-step hidden outputs for this chunk
    h_last_ref / c_last_ref: (B, H) final states (written only on last chunk)
    h_sc / c_sc: (B, H) VMEM carries persisting across chunks of a direction.
    """
    chunk = pl.program_id(1)

    @pl.when(chunk == 0)
    def _init():
        h_sc[...] = jnp.zeros_like(h_sc)
        c_sc[...] = jnp.zeros_like(c_sc)

    hdim = h_sc.shape[1]
    whh = whh_ref[...]  # loaded once per chunk, reused by every step

    def step(i, carry):
        h, c = carry
        gates = gx_ref[i] + jnp.dot(h, whh, preferred_element_type=jnp.float32)
        i_g = jax.nn.sigmoid(gates[:, 0 * hdim:1 * hdim])
        f_g = jax.nn.sigmoid(gates[:, 1 * hdim:2 * hdim])
        g_g = jnp.tanh(gates[:, 2 * hdim:3 * hdim])
        o_g = jax.nn.sigmoid(gates[:, 3 * hdim:4 * hdim])
        c_new = f_g * c + i_g * g_g
        h_new = o_g * jnp.tanh(c_new)
        out_ref[i] = h_new
        return h_new, c_new

    h_f, c_f = lax.fori_loop(0, t_chunk, step, (h_sc[...], c_sc[...]))
    h_sc[...] = h_f
    c_sc[...] = c_f

    # Only the last chunk produces the final states (no redundant stores).
    @pl.when(chunk == pl.num_programs(1) - 1)
    def _finalize():
        h_last_ref[...] = h_f
        c_last_ref[...] = c_f


def _pick_time_chunk(t, max_chunk=128):
    """Largest divisor of t not exceeding max_chunk (amortizes grid overhead)."""
    for c in range(min(t, max_chunk), 0, -1):
        if t % c == 0:
            return c
    return t


def lstm_layer_bidir(gates_x, whh):
    """Run one LSTM layer for both directions.

    gates_x: (2, T, B, 4H) precomputed input projections (dir 0 = fwd,
             dir 1 = rev, already in processing-time order).
    whh:     (2, H, 4H) recurrent weights per direction.
    Returns (seq_out (2,T,B,H), h_n (2,B,H), c_n (2,B,H)).
    """
    ndir, T, B, G = gates_x.shape
    H = whh.shape[1]
    assert G == 4 * H and ndir == 2
    t_chunk = _pick_time_chunk(T)
    num_chunks = T // t_chunk

    grid_spec = pltpu.PrefetchScalarGridSpec(
        num_scalar_prefetch=0,
        grid=(ndir, num_chunks),
        in_specs=[
            pl.BlockSpec((None, t_chunk, B, G), lambda d, c: (d, c, 0, 0)),
            pl.BlockSpec((None, H, G), lambda d, c: (d, 0, 0)),
        ],
        out_specs=[
            pl.BlockSpec((None, t_chunk, B, H), lambda d, c: (d, c, 0, 0)),
            pl.BlockSpec((None, B, H), lambda d, c: (d, 0, 0)),
            pl.BlockSpec((None, B, H), lambda d, c: (d, 0, 0)),
        ],
        scratch_shapes=[
            pltpu.VMEM((B, H), jnp.float32),  # h carry
            pltpu.VMEM((B, H), jnp.float32),  # c carry
        ],
    )

    kernel = functools.partial(_lstm_chunk_kernel, t_chunk=t_chunk)
    return pl.pallas_call(
        kernel,
        out_shape=(
            jax.ShapeDtypeStruct((ndir, T, B, H), jnp.float32),
            jax.ShapeDtypeStruct((ndir, B, H), jnp.float32),
            jax.ShapeDtypeStruct((ndir, B, H), jnp.float32),
        ),
        grid_spec=grid_spec,
        compiler_params=pltpu.CompilerParams(
            # direction axis -> megacore-parallel on v7x; time chunks sequential.
            dimension_semantics=("parallel", "arbitrary"),
            vmem_limit_bytes=64 * 1024 * 1024,
        ),
    )(gates_x, whh)


def init_params(key):
    """Deterministic stand-in for bi_awd.load_pretrained().

    Bias is the pre-summed PyTorch b_ih + b_hh.  Weights stored transposed.
    """
    layer_dims = []
    d_in = NINP
    for l in range(NLAYERS):
        d_out = NHID if l < NLAYERS - 1 else NINP  # tie_weights => last -> ninp
        layer_dims.append((d_in, d_out))
        d_in = d_out

    keys = jax.random.split(key, 1 + 2 * NLAYERS * 3)
    emb_table = 0.1 * jax.random.normal(keys[0], (NTOKEN, NINP), jnp.float32)

    def make_layer(kw, kr, kb, din, h):
        bound = 1.0 / jnp.sqrt(h)
        wih = jax.random.uniform(kw, (din, 4 * h), jnp.float32, -bound, bound)
        whh = jax.random.uniform(kr, (h, 4 * h), jnp.float32, -bound, bound)
        b = jax.random.uniform(kb, (1, 4 * h), jnp.float32, -bound, bound)
        return (wih, whh, b)

    fwd, rev = [], []
    k_idx = 1
    for direction in (fwd, rev):
        for (din, h) in layer_dims:
            direction.append(make_layer(keys[k_idx], keys[k_idx + 1],
                                        keys[k_idx + 2], din, h))
            k_idx += 3

    return {"emb_table": emb_table, "fwd": fwd, "rev": rev}


@jax.jit
def encoder_forward(tokens, seq_lengths, params):
    """Reproduces Encoder.forward: ((outputs, outputs_rev),
    (hidden, hidden_rev), emb), time-major.

    tokens: (T, B) int32 token ids, seq_lengths: (B,) int32.
    """
    del seq_lengths  # TODO(synk): pack_padded_sequence / per-sequence length masking not handled; all sequences treated as full length.

    # Embedding lookup (gather) kept as plain-JAX glue; shared by both directions.
    emb = params["emb_table"][tokens]  # (T, B, NINP) float32

    # Reverse stack consumes the time-reversed sequence (cheap one-time XLA
    # reverse of the (T,B,NINP) embedding); its outputs stay in that
    # processing order, like bi_awd.
    x_fwd = emb
    x_rev = emb[::-1]

    outs_fwd, outs_rev = [], []
    hid_fwd, hid_rev = [], []
    for l in range(NLAYERS):
        wih_f, whh_f, b_f = params["fwd"][l]
        wih_r, whh_r, b_r = params["rev"][l]

        # Hoisted input projection: one large GEMM per direction (MXU-friendly
        # M = T*B), bias folded in.  Only h @ W_hh remains in the kernel.
        gx_f = jnp.einsum("tbi,ih->tbh", x_fwd, wih_f,
                          preferred_element_type=jnp.float32) + b_f
        gx_r = jnp.einsum("tbi,ih->tbh", x_rev, wih_r,
                          preferred_element_type=jnp.float32) + b_r

        gates_x = jnp.stack([gx_f, gx_r])          # (2, T, B, 4H)
        whh = jnp.stack([whh_f, whh_r])            # (2, H, 4H)

        seq_out, h_n, c_n = lstm_layer_bidir(gates_x, whh)

        x_fwd, x_rev = seq_out[0], seq_out[1]
        outs_fwd.append(seq_out[0])
        outs_rev.append(seq_out[1])
        hid_fwd.append((h_n[0], c_n[0]))
        hid_rev.append((h_n[1], c_n[1]))

    return ((tuple(outs_fwd), tuple(outs_rev)),
            (tuple(hid_fwd), tuple(hid_rev)),
            emb)


if __name__ == "__main__":
    key = jax.random.PRNGKey(0)
    k_tok, k_par = jax.random.split(key)

    tokens = jax.random.randint(k_tok, (SEQ_LEN, BATCH), 0, NTOKEN, dtype=jnp.int32)
    seq_lengths = jnp.full((BATCH,), SEQ_LEN, dtype=jnp.int32)
    params = init_params(k_par)

    (outs, outs_rev), (hid, hid_rev), emb = encoder_forward(tokens, seq_lengths, params)

    jax.block_until_ready((outs, outs_rev, hid, hid_rev, emb))

    # Light sanity checks on shapes.
    assert emb.shape == (SEQ_LEN, BATCH, NINP)
    assert outs[0].shape == (SEQ_LEN, BATCH, NHID)
    assert outs[-1].shape == (SEQ_LEN, BATCH, NINP)     # tie_weights
    assert outs_rev[-1].shape == (SEQ_LEN, BATCH, NINP)
    assert hid[-1][0].shape == (BATCH, NINP)
    assert all(jnp.all(jnp.isfinite(o)) for o in outs + outs_rev)

    print("KERNEL_OK")
</pallas_src>

<mosaic_0001>
module attributes {stable_mosaic.version = 11 : i64} {
  func.func @_lstm_chunk_kernel(%arg0: i32, %arg1: i32, %arg2: memref<1x8x2x256xf32, #tpu.memory_space<vmem>>, %arg3: memref<1x64x256xf32, #tpu.memory_space<vmem>>, %arg4: memref<1x8x2x64xf32, #tpu.memory_space<vmem>>, %arg5: memref<1x2x64xf32, #tpu.memory_space<vmem>>, %arg6: memref<1x2x64xf32, #tpu.memory_space<vmem>>, %arg7: memref<2x64xf32, #tpu.memory_space<vmem>>, %arg8: memref<2x64xf32, #tpu.memory_space<vmem>>) attributes {dimension_semantics = [#tpu.dimension_semantics<parallel>, #tpu.dimension_semantics<arbitrary>], iteration_bounds = array<i64: 2, 1>, scalar_prefetch = 0 : i64, scratch_operands = 2 : i64, tpu.core_type = #tpu.core_type<tc>, window_params = [{transform_indices = @transform_0, window_bounds = array<i64: 1, 8, 2, 256>}, {transform_indices = @transform_1, window_bounds = array<i64: 1, 64, 256>}, {transform_indices = @transform_2, window_bounds = array<i64: 1, 8, 2, 64>}, {transform_indices = @transform_3, window_bounds = array<i64: 1, 2, 64>}, {transform_indices = @transform_4, window_bounds = array<i64: 1, 2, 64>}]} {
    %c0_i32 = arith.constant 0 : i32
    %0 = arith.cmpi eq, %arg1, %c0_i32 : i32
    %1 = arith.extui %0 : i1 to i32
    %c0_i32_0 = arith.constant 0 : i32
    %2 = arith.cmpi ne, %1, %c0_i32_0 : i32
    scf.if %2 {
      %cst = arith.constant 0.000000e+00 : f32
      %14 = vector.broadcast %cst : f32 to vector<2x64xf32>
      %c0_15 = arith.constant 0 : index
      %c0_16 = arith.constant 0 : index
      %15 = vector.load %arg7[%c0_15, %c0_16] : memref<2x64xf32, #tpu.memory_space<vmem>>, vector<2x64xf32>
      tpu.vector_store %arg7[%c0_15, %c0_16], %14 {strides = array<i32>} : memref<2x64xf32, #tpu.memory_space<vmem>>, vector<2x64xf32>,
      %cst_17 = arith.constant 0.000000e+00 : f32
      %16 = vector.broadcast %cst_17 : f32 to vector<2x64xf32>
      %c0_18 = arith.constant 0 : index
      %c0_19 = arith.constant 0 : index
      %17 = vector.load %arg8[%c0_18, %c0_19] : memref<2x64xf32, #tpu.memory_space<vmem>>, vector<2x64xf32>
      tpu.vector_store %arg8[%c0_18, %c0_19], %16 {strides = array<i32>} : memref<2x64xf32, #tpu.memory_space<vmem>>, vector<2x64xf32>,
    } else {
    }
    %c0 = arith.constant 0 : index
    %c0_1 = arith.constant 0 : index
    %c0_2 = arith.constant 0 : index
    %3 = vector.load %arg3[%c0, %c0_1, %c0_2] : memref<1x64x256xf32, #tpu.memory_space<vmem>>, vector<1x64x256xf32>
    %4 = vector.shape_cast %3 : vector<1x64x256xf32> to vector<64x256xf32>
    %c0_3 = arith.constant 0 : index
    %c0_4 = arith.constant 0 : index
    %5 = vector.load %arg7[%c0_3, %c0_4] : memref<2x64xf32, #tpu.memory_space<vmem>>, vector<2x64xf32>
    %c0_5 = arith.constant 0 : index
    %c0_6 = arith.constant 0 : index
    %6 = vector.load %arg8[%c0_5, %c0_6] : memref<2x64xf32, #tpu.memory_space<vmem>>, vector<2x64xf32>
    %c0_i32_7 = arith.constant 0 : i32
    %c8_i32 = arith.constant 8 : i32
    %7 = arith.addi %c0_i32_7, %c8_i32 : i32
    %c1_i32 = arith.constant 1 : i32
    %8:2 = scf.for %arg9 = %c0_i32_7 to %7 step %c1_i32 iter_args(%arg10 = %5, %arg11 = %6) -> (vector<2x64xf32>, vector<2x64xf32>)  : i32 {
      %c0_15 = arith.constant 0 : index
      %14 = arith.index_cast %arg9 : i32 to index
      %c0_16 = arith.constant 0 : index
      %c0_17 = arith.constant 0 : index
      %15 = vector.load %arg2[%c0_15, %14, %c0_16, %c0_17] : memref<1x8x2x256xf32, #tpu.memory_space<vmem>>, vector<1x1x2x256xf32>
      %16 = vector.shape_cast %15 : vector<1x1x2x256xf32> to vector<2x256xf32>
      %cst = arith.constant dense<0.000000e+00> : vector<2x256xf32>
      %17 = tpu.matmul %arg10, %4, %cst {dimension_numbers = #tpu.dot_dimension_numbers<[1], [0], [0], [1], [0, 0, 1, 1], [], []>} : vector<2x64xf32>, vector<64x256xf32>, vector<2x256xf32> -> vector<2x256xf32>
      %18 = arith.addf %16, %17 : vector<2x256xf32>
      %19 = vector.extract_strided_slice %18 {offsets = [0, 0], sizes = [2, 64], strides = [1, 1]} : vector<2x256xf32> to vector<2x64xf32>
      %20 = arith.negf %19 : vector<2x64xf32>
      %21 = math.exp %20 : vector<2x64xf32>
      %cst_18 = arith.constant 1.000000e+00 : f32
      %22 = vector.broadcast %cst_18 : f32 to vector<2x64xf32>
      %23 = arith.addf %22, %21 : vector<2x64xf32>
      %24 = arith.divf %22, %23 : vector<2x64xf32>
      %25 = vector.extract_strided_slice %18 {offsets = [0, 64], sizes = [2, 64], strides = [1, 1]} : vector<2x256xf32> to vector<2x64xf32>
      %26 = arith.negf %25 : vector<2x64xf32>
      %27 = math.exp %26 : vector<2x64xf32>
      %cst_19 = arith.constant 1.000000e+00 : f32
      %28 = vector.broadcast %cst_19 : f32 to vector<2x64xf32>
      %29 = arith.addf %28, %27 : vector<2x64xf32>
      %30 = arith.divf %28, %29 : vector<2x64xf32>
      %31 = vector.extract_strided_slice %18 {offsets = [0, 128], sizes = [2, 64], strides = [1, 1]} : vector<2x256xf32> to vector<2x64xf32>
      %32 = math.tanh %31 : vector<2x64xf32>
      %33 = vector.extract_strided_slice %18 {offsets = [0, 192], sizes = [2, 64], strides = [1, 1]} : vector<2x256xf32> to vector<2x64xf32>
      %34 = arith.negf %33 : vector<2x64xf32>
      %35 = math.exp %34 : vector<2x64xf32>
      %cst_20 = arith.constant 1.000000e+00 : f32
      %36 = vector.broadcast %cst_20 : f32 to vector<2x64xf32>
      %37 = arith.addf %36, %35 : vector<2x64xf32>
      %38 = arith.divf %36, %37 : vector<2x64xf32>
      %39 = arith.mulf %30, %arg11 : vector<2x64xf32>
      %40 = arith.mulf %24, %32 : vector<2x64xf32>
      %41 = arith.addf %39, %40 : vector<2x64xf32>
      %42 = math.tanh %41 : vector<2x64xf32>
      %43 = arith.mulf %38, %42 : vector<2x64xf32>
      %c0_21 = arith.constant 0 : index
      %44 = arith.index_cast %arg9 : i32 to index
      %c0_22 = arith.constant 0 : index
      %c0_23 = arith.constant 0 : index
      %45 = vector.load %arg4[%c0_21, %44, %c0_22, %c0_23] : memref<1x8x2x64xf32, #tpu.memory_space<vmem>>, vector<1x1x2x64xf32>
      %46 = vector.shape_cast %45 : vector<1x1x2x64xf32> to vector<2x64xf32>
      %47 = vector.shape_cast %43 : vector<2x64xf32> to vector<1x1x2x64xf32>
      tpu.vector_store %arg4[%c0_21, %44, %c0_22, %c0_23], %47 {strides = array<i32>} : memref<1x8x2x64xf32, #tpu.memory_space<vmem>>, vector<1x1x2x64xf32>,
      scf.yield %43, %41 : vector<2x64xf32>, vector<2x64xf32>
    }
    %c8_i32_8 = arith.constant 8 : i32
    %c0_9 = arith.constant 0 : index
    %c0_10 = arith.constant 0 : index
    %9 = vector.load %arg7[%c0_9, %c0_10] : memref<2x64xf32, #tpu.memory_space<vmem>>, vector<2x64xf32>
    tpu.vector_store %arg7[%c0_9, %c0_10], %8#0 {strides = array<i32>} : memref<2x64xf32, #tpu.memory_space<vmem>>, vector<2x64xf32>,
    %c0_11 = arith.constant 0 : index
    %c0_12 = arith.constant 0 : index
    %10 = vector.load %arg8[%c0_11, %c0_12] : memref<2x64xf32, #tpu.memory_space<vmem>>, vector<2x64xf32>
    tpu.vector_store %arg8[%c0_11, %c0_12], %8#1 {strides = array<i32>} : memref<2x64xf32, #tpu.memory_space<vmem>>, vector<2x64xf32>,
    %c0_i32_13 = arith.constant 0 : i32
    %11 = arith.cmpi eq, %arg1, %c0_i32_13 : i32
    %12 = arith.extui %11 : i1 to i32
    %c0_i32_14 = arith.constant 0 : i32
    %13 = arith.cmpi ne, %12, %c0_i32_14 : i32
    scf.if %13 {
      %c0_15 = arith.constant 0 : index
      %c0_16 = arith.constant 0 : index
      %c0_17 = arith.constant 0 : index
      %14 = vector.load %arg5[%c0_15, %c0_16, %c0_17] : memref<1x2x64xf32, #tpu.memory_space<vmem>>, vector<1x2x64xf32>
      %15 = vector.shape_cast %14 : vector<1x2x64xf32> to vector<2x64xf32>
      %16 = vector.shape_cast %8#0 : vector<2x64xf32> to vector<1x2x64xf32>
      tpu.vector_store %arg5[%c0_15, %c0_16, %c0_17], %16 {strides = array<i32>} : memref<1x2x64xf32, #tpu.memory_space<vmem>>, vector<1x2x64xf32>,
      %c0_18 = arith.constant 0 : index
      %c0_19 = arith.constant 0 : index
      %c0_20 = arith.constant 0 : index
      %17 = vector.load %arg6[%c0_18, %c0_19, %c0_20] : memref<1x2x64xf32, #tpu.memory_space<vmem>>, vector<1x2x64xf32>
      %18 = vector.shape_cast %17 : vector<1x2x64xf32> to vector<2x64xf32>
      %19 = vector.shape_cast %8#1 : vector<2x64xf32> to vector<1x2x64xf32>
      tpu.vector_store %arg6[%c0_18, %c0_19, %c0_20], %19 {strides = array<i32>} : memref<1x2x64xf32, #tpu.memory_space<vmem>>, vector<1x2x64xf32>,
    } else {
    }
    return
  }
  func.func @transform_0(%arg0: i32, %arg1: i32) -> (i32, i32, i32, i32) {
    %c0_i32 = arith.constant 0 : i32
    %c0_i32_0 = arith.constant 0 : i32
    %c0_i32_1 = arith.constant 0 : i32
    return %arg0, %arg1, %c0_i32, %c0_i32_0 : i32, i32, i32, i32
  }
  func.func @transform_1(%arg0: i32, %arg1: i32) -> (i32, i32, i32) {
    %c0_i32 = arith.constant 0 : i32
    %c0_i32_0 = arith.constant 0 : i32
    %c0_i32_1 = arith.constant 0 : i32
    return %arg0, %c0_i32, %c0_i32_0 : i32, i32, i32
  }
  func.func @transform_2(%arg0: i32, %arg1: i32) -> (i32, i32, i32, i32) {
    %c0_i32 = arith.constant 0 : i32
    %c0_i32_0 = arith.constant 0 : i32
    %c0_i32_1 = arith.constant 0 : i32
    return %arg0, %arg1, %c0_i32, %c0_i32_0 : i32, i32, i32, i32
  }
  func.func @transform_3(%arg0: i32, %arg1: i32) -> (i32, i32, i32) {
    %c0_i32 = arith.constant 0 : i32
    %c0_i32_0 = arith.constant 0 : i32
    %c0_i32_1 = arith.constant 0 : i32
    return %arg0, %c0_i32, %c0_i32_0 : i32, i32, i32
  }
  func.func @transform_4(%arg0: i32, %arg1: i32) -> (i32, i32, i32) {
    %c0_i32 = arith.constant 0 : i32
    %c0_i32_0 = arith.constant 0 : i32
    %c0_i32_1 = arith.constant 0 : i32
    return %arg0, %c0_i32, %c0_i32_0 : i32, i32, i32
  }
}

module attributes {stable_mosaic.version = 11 : i64} {
  func.func @_lstm_chunk_kernel(%arg0: i32, %arg1: i32, %arg2: memref<1x8x2x128xf32, #tpu.memory_space<vmem>>, %arg3: memref<1x32x128xf32, #tpu.memory_space<vmem>>, %arg4: memref<1x8x2x32xf32, #tpu.memory_space<vmem>>, %arg5: memref<1x2x32xf32, #tpu.memory_space<vmem>>, %arg6: memref<1x2x32xf32, #tpu.memory_space<vmem>>, %arg7: memref<2x32xf32, #tpu.memory_space<vmem>>, %arg8: memref<2x32xf32, #tpu.memory_space<vmem>>) attributes {dimension_semantics = [#tpu.dimension_semantics<parallel>, #tpu.dimension_semantics<arbitrary>], iteration_bounds = array<i64: 2, 1>, scalar_prefetch = 0 : i64, scratch_operands = 2 : i64, tpu.core_type = #tpu.core_type<tc>, window_params = [{transform_indices = @transform_0, window_bounds = array<i64: 1, 8, 2, 128>}, {transform_indices = @transform_1, window_bounds = array<i64: 1, 32, 128>}, {transform_indices = @transform_2, window_bounds = array<i64: 1, 8, 2, 32>}, {transform_indices = @transform_3, window_bounds = array<i64: 1, 2, 32>}, {transform_indices = @transform_4, window_bounds = array<i64: 1, 2, 32>}]} {
    %c0_i32 = arith.constant 0 : i32
    %0 = arith.cmpi eq, %arg1, %c0_i32 : i32
    %1 = arith.extui %0 : i1 to i32
    %c0_i32_0 = arith.constant 0 : i32
    %2 = arith.cmpi ne, %1, %c0_i32_0 : i32
    scf.if %2 {
      %cst = arith.constant 0.000000e+00 : f32
      %14 = vector.broadcast %cst : f32 to vector<2x32xf32>
      %c0_15 = arith.constant 0 : index
      %c0_16 = arith.constant 0 : index
      %15 = vector.load %arg7[%c0_15, %c0_16] : memref<2x32xf32, #tpu.memory_space<vmem>>, vector<2x32xf32>
      tpu.vector_store %arg7[%c0_15, %c0_16], %14 {strides = array<i32>} : memref<2x32xf32, #tpu.memory_space<vmem>>, vector<2x32xf32>,
      %cst_17 = arith.constant 0.000000e+00 : f32
      %16 = vector.broadcast %cst_17 : f32 to vector<2x32xf32>
      %c0_18 = arith.constant 0 : index
      %c0_19 = arith.constant 0 : index
      %17 = vector.load %arg8[%c0_18, %c0_19] : memref<2x32xf32, #tpu.memory_space<vmem>>, vector<2x32xf32>
      tpu.vector_store %arg8[%c0_18, %c0_19], %16 {strides = array<i32>} : memref<2x32xf32, #tpu.memory_space<vmem>>, vector<2x32xf32>,
    } else {
    }
    %c0 = arith.constant 0 : index
    %c0_1 = arith.constant 0 : index
    %c0_2 = arith.constant 0 : index
    %3 = vector.load %arg3[%c0, %c0_1, %c0_2] : memref<1x32x128xf32, #tpu.memory_space<vmem>>, vector<1x32x128xf32>
    %4 = vector.shape_cast %3 : vector<1x32x128xf32> to vector<32x128xf32>
    %c0_3 = arith.constant 0 : index
    %c0_4 = arith.constant 0 : index
    %5 = vector.load %arg7[%c0_3, %c0_4] : memref<2x32xf32, #tpu.memory_space<vmem>>, vector<2x32xf32>
    %c0_5 = arith.constant 0 : index
    %c0_6 = arith.constant 0 : index
    %6 = vector.load %arg8[%c0_5, %c0_6] : memref<2x32xf32, #tpu.memory_space<vmem>>, vector<2x32xf32>
    %c0_i32_7 = arith.constant 0 : i32
    %c8_i32 = arith.constant 8 : i32
    %7 = arith.addi %c0_i32_7, %c8_i32 : i32
    %c1_i32 = arith.constant 1 : i32
    %8:2 = scf.for %arg9 = %c0_i32_7 to %7 step %c1_i32 iter_args(%arg10 = %5, %arg11 = %6) -> (vector<2x32xf32>, vector<2x32xf32>)  : i32 {
      %c0_15 = arith.constant 0 : index
      %14 = arith.index_cast %arg9 : i32 to index
      %c0_16 = arith.constant 0 : index
      %c0_17 = arith.constant 0 : index
      %15 = vector.load %arg2[%c0_15, %14, %c0_16, %c0_17] : memref<1x8x2x128xf32, #tpu.memory_space<vmem>>, vector<1x1x2x128xf32>
      %16 = vector.shape_cast %15 : vector<1x1x2x128xf32> to vector<2x128xf32>
      %cst = arith.constant dense<0.000000e+00> : vector<2x128xf32>
      %17 = tpu.matmul %arg10, %4, %cst {dimension_numbers = #tpu.dot_dimension_numbers<[1], [0], [0], [1], [0, 0, 1, 1], [], []>} : vector<2x32xf32>, vector<32x128xf32>, vector<2x128xf32> -> vector<2x128xf32>
      %18 = arith.addf %16, %17 : vector<2x128xf32>
      %19 = vector.extract_strided_slice %18 {offsets = [0, 0], sizes = [2, 32], strides = [1, 1]} : vector<2x128xf32> to vector<2x32xf32>
      %20 = arith.negf %19 : vector<2x32xf32>
      %21 = math.exp %20 : vector<2x32xf32>
      %cst_18 = arith.constant 1.000000e+00 : f32
      %22 = vector.broadcast %cst_18 : f32 to vector<2x32xf32>
      %23 = arith.addf %22, %21 : vector<2x32xf32>
      %24 = arith.divf %22, %23 : vector<2x32xf32>
      %25 = vector.extract_strided_slice %18 {offsets = [0, 32], sizes = [2, 32], strides = [1, 1]} : vector<2x128xf32> to vector<2x32xf32>
      %26 = arith.negf %25 : vector<2x32xf32>
      %27 = math.exp %26 : vector<2x32xf32>
      %cst_19 = arith.constant 1.000000e+00 : f32
      %28 = vector.broadcast %cst_19 : f32 to vector<2x32xf32>
      %29 = arith.addf %28, %27 : vector<2x32xf32>
      %30 = arith.divf %28, %29 : vector<2x32xf32>
      %31 = vector.extract_strided_slice %18 {offsets = [0, 64], sizes = [2, 32], strides = [1, 1]} : vector<2x128xf32> to vector<2x32xf32>
      %32 = math.tanh %31 : vector<2x32xf32>
      %33 = vector.extract_strided_slice %18 {offsets = [0, 96], sizes = [2, 32], strides = [1, 1]} : vector<2x128xf32> to vector<2x32xf32>
      %34 = arith.negf %33 : vector<2x32xf32>
      %35 = math.exp %34 : vector<2x32xf32>
      %cst_20 = arith.constant 1.000000e+00 : f32
      %36 = vector.broadcast %cst_20 : f32 to vector<2x32xf32>
      %37 = arith.addf %36, %35 : vector<2x32xf32>
      %38 = arith.divf %36, %37 : vector<2x32xf32>
      %39 = arith.mulf %30, %arg11 : vector<2x32xf32>
      %40 = arith.mulf %24, %32 : vector<2x32xf32>
      %41 = arith.addf %39, %40 : vector<2x32xf32>
      %42 = math.tanh %41 : vector<2x32xf32>
      %43 = arith.mulf %38, %42 : vector<2x32xf32>
      %c0_21 = arith.constant 0 : index
      %44 = arith.index_cast %arg9 : i32 to index
      %c0_22 = arith.constant 0 : index
      %c0_23 = arith.constant 0 : index
      %45 = vector.load %arg4[%c0_21, %44, %c0_22, %c0_23] : memref<1x8x2x32xf32, #tpu.memory_space<vmem>>, vector<1x1x2x32xf32>
      %46 = vector.shape_cast %45 : vector<1x1x2x32xf32> to vector<2x32xf32>
      %47 = vector.shape_cast %43 : vector<2x32xf32> to vector<1x1x2x32xf32>
      tpu.vector_store %arg4[%c0_21, %44, %c0_22, %c0_23], %47 {strides = array<i32>} : memref<1x8x2x32xf32, #tpu.memory_space<vmem>>, vector<1x1x2x32xf32>,
      scf.yield %43, %41 : vector<2x32xf32>, vector<2x32xf32>
    }
    %c8_i32_8 = arith.constant 8 : i32
    %c0_9 = arith.constant 0 : index
    %c0_10 = arith.constant 0 : index
    %9 = vector.load %arg7[%c0_9, %c0_10] : memref<2x32xf32, #tpu.memory_space<vmem>>, vector<2x32xf32>
    tpu.vector_store %arg7[%c0_9, %c0_10], %8#0 {strides = array<i32>} : memref<2x32xf32, #tpu.memory_space<vmem>>, vector<2x32xf32>,
    %c0_11 = arith.constant 0 : index
    %c0_12 = arith.constant 0 : index
    %10 = vector.load %arg8[%c0_11, %c0_12] : memref<2x32xf32, #tpu.memory_space<vmem>>, vector<2x32xf32>
    tpu.vector_store %arg8[%c0_11, %c0_12], %8#1 {strides = array<i32>} : memref<2x32xf32, #tpu.memory_space<vmem>>, vector<2x32xf32>,
    %c0_i32_13 = arith.constant 0 : i32
    %11 = arith.cmpi eq, %arg1, %c0_i32_13 : i32
    %12 = arith.extui %11 : i1 to i32
    %c0_i32_14 = arith.constant 0 : i32
    %13 = arith.cmpi ne, %12, %c0_i32_14 : i32
    scf.if %13 {
      %c0_15 = arith.constant 0 : index
      %c0_16 = arith.constant 0 : index
      %c0_17 = arith.constant 0 : index
      %14 = vector.load %arg5[%c0_15, %c0_16, %c0_17] : memref<1x2x32xf32, #tpu.memory_space<vmem>>, vector<1x2x32xf32>
      %15 = vector.shape_cast %14 : vector<1x2x32xf32> to vector<2x32xf32>
      %16 = vector.shape_cast %8#0 : vector<2x32xf32> to vector<1x2x32xf32>
      tpu.vector_store %arg5[%c0_15, %c0_16, %c0_17], %16 {strides = array<i32>} : memref<1x2x32xf32, #tpu.memory_space<vmem>>, vector<1x2x32xf32>,
      %c0_18 = arith.constant 0 : index
      %c0_19 = arith.constant 0 : index
      %c0_20 = arith.constant 0 : index
      %17 = vector.load %arg6[%c0_18, %c0_19, %c0_20] : memref<1x2x32xf32, #tpu.memory_space<vmem>>, vector<1x2x32xf32>
      %18 = vector.shape_cast %17 : vector<1x2x32xf32> to vector<2x32xf32>
      %19 = vector.shape_cast %8#1 : vector<2x32xf32> to vector<1x2x32xf32>
      tpu.vector_store %arg6[%c0_18, %c0_19, %c0_20], %19 {strides = array<i32>} : memref<1x2x32xf32, #tpu.memory_space<vmem>>, vector<1x2x32xf32>,
    } else {
    }
    return
  }
  func.func @transform_0(%arg0: i32, %arg1: i32) -> (i32, i32, i32, i32) {
    %c0_i32 = arith.constant 0 : i32
    %c0_i32_0 = arith.constant 0 : i32
    %c0_i32_1 = arith.constant 0 : i32
    return %arg0, %arg1, %c0_i32, %c0_i32_0 : i32, i32, i32, i32
  }
  func.func @transform_1(%arg0: i32, %arg1: i32) -> (i32, i32, i32) {
    %c0_i32 = arith.constant 0 : i32
    %c0_i32_0 = arith.constant 0 : i32
    %c0_i32_1 = arith.constant 0 : i32
    return %arg0, %c0_i32, %c0_i32_0 : i32, i32, i32
  }
  func.func @transform_2(%arg0: i32, %arg1: i32) -> (i32, i32, i32, i32) {
    %c0_i32 = arith.constant 0 : i32
    %c0_i32_0 = arith.constant 0 : i32
    %c0_i32_1 = arith.constant 0 : i32
    return %arg0, %arg1, %c0_i32, %c0_i32_0 : i32, i32, i32, i32
  }
  func.func @transform_3(%arg0: i32, %arg1: i32) -> (i32, i32, i32) {
    %c0_i32 = arith.constant 0 : i32
    %c0_i32_0 = arith.constant 0 : i32
    %c0_i32_1 = arith.constant 0 : i32
    return %arg0, %c0_i32, %c0_i32_0 : i32, i32, i32
  }
  func.func @transform_4(%arg0: i32, %arg1: i32) -> (i32, i32, i32) {
    %c0_i32 = arith.constant 0 : i32
    %c0_i32_0 = arith.constant 0 : i32
    %c0_i32_1 = arith.constant 0 : i32
    return %arg0, %c0_i32, %c0_i32_0 : i32, i32, i32
  }
}

</mosaic_0001>

<bundles_post_ra>
// kernel: encoder_forward.3
= control target key start
LH: loop header
LB: loop body
LE: loop exit
PB: predicated region body
PF: predicated region fallthrough
CT: control target
= control target key end

     0   :  { %s1548_s0 = inlined_call_operand.hbm [shape: f32[2,8,2,256], index: 0, kind: input, shape index: {}]   ;;  %s1549_s1 = inlined_call_operand.hbm [shape: f32[2,64,256], index: 1, kind: input, shape index: {}]   ;;  %s1550_s2 = inlined_call_operand.hbm [shape: f32[2,8,2,64], index: 2, kind: output, shape index: {0}]   ;;  %s1551_s3 = inlined_call_operand.hbm [shape: f32[2,2,64], index: 3, kind: output, shape index: {1}]   ;;  %s1552_s4 = inlined_call_operand.hbm [shape: f32[2,2,64], index: 4, kind: output, shape index: {2}]  }
   0x1   :  { %1556 = sst [smem:[#allocation17_spill]] %s1548_s0 }
   0x2   :  { %10 = vsyncpa [#allocation5], 0 }
   0x3   :  { %12 = vsyncpa [#allocation5 + $0x1], 0 }
   0x4   :  { %13 = vsyncpa [#allocation8], 0 }
   0x5   :  { %15 = vsyncpa [#allocation8 + $0x1], 0 }
   0x6   :  { %16 = vsyncpa [#allocation6], 0 }
   0x7   :  { %18 = vsyncpa [#allocation6 + $0x1], 0 }
   0x8   :  { %19 = vsyncpa [#allocation11], 0 }
   0x9   :  { %21 = vsyncpa [#allocation11 + $0x1], 0  ;;  %s1168_s15 = smov 0   ;;  %s1170_s16 = smov 0  }
   0xa   :  { %s1172_s17 = smov 0   ;;  %s1174_s18 = smov 0  }
   0xb   :  { %s1176_s19 = smov 0   ;;  %s1178_s20 = smov 0  }
   0xc LB: > { %s1199_s21 = sadd.s32 4294967295, %s1114_s20   ;;  %s1554_s22 = sadd.s32 4294967294, %s1114_s20   ;;  %s1114_s20 = sphi %s1178_s20, %s27_s20   ;;  %s1110_s19 = sphi %s1176_s19, %s1576_s19   ;;  %s1106_s18 = sphi %s1174_s18, %s1575_s18   ;;  %s1102_s17 = sphi %s1172_s17, %s1574_s17   ;;  %s1098_s16 = sphi %s1170_s16, %s1573_s16   ;;  %s1094_s15 = sphi %s1168_s15, %s1572_s15  }
   0xd   : > { %s39_s23 = sadd.s32 1, %s1110_s19  ;;  %s48_s24 = sadd.s32 1, %s1102_s17 }
   0xe   : > { %p41_p0 = scmp.ge.s32.totalorder %s39_s23, 2  ;;  %p55_p1 = scmp.ne.s32.totalorder %s1102_s17, %s1098_s16 }
   0xf   : > { %p56_p2 = scmp.eq.s32.totalorder %s1114_s20, 0  ;;  %p61_p3 = scmp.ne.s32.totalorder %s1098_s16, %s1094_s15 }
  0x10   : > { %s1578_s23 = smov (%p41_p0, %s39_s23), 0  ;;  %p62_p5 = scmp.eq.s32.totalorder %s1199_s21, 0 }
  0x11   : > { %p1211_p4 = por %p56_p2, %p55_p1  ;;  %s43_s26 = ssub.s32 %s1110_s19, %s1578_s23 }
  0x12   : > { %p113_p6 = scmp.eq.s32.totalorder %s1199_s21, 1  ;;  %p46_p7 = scmp.eq.s32.totalorder %s43_s26, 0 }
  0x13   : > { %p1219_p8 = por %p62_p5, %p61_p3  ;;  %p119_p10 = scmp.eq.s32.totalorder %s1554_s22, 1 }
  0x14   : > { %p1223_p9 = por %p113_p6, %p55_p1  ;;  %p800_p13 = scmp.lt.s32.totalorder %s1114_s20, 2 }
  0x15   : > { %s1558_s27 = scalar_select %p1219_p8, 1, 0 }
  0x16   : > { %s1559_s28 = scalar_select %p1223_p9, 1, 0 }
  0x17   : > { %s1230_s29 = scalar_select %p46_p7, %s1102_s17, %s48_s24  }
  0x18   : > { %p1232_p11 = por %p119_p10, %p61_p3  ;;  %s1239_s5 = sand.u32 1, %s1102_s17  }
  0x19   : > { %s727_s6 = sshll.u32 %s1239_s5, 5  ;;  %s753_s7 = sshll.u32 %s1110_s19, 9 }
  0x1a   : > { %s1560_s30 = scalar_select %p1232_p11, 1, 0 }
  0x1b   : > { %s1561_s0 = sld [smem:[#allocation17_spill]]  ;;  %s195_s11 = scalar_lea.vmem [#allocation4], %s727_s6 }
  0x1c   : > { %s205_s12 = sshll.u32 %s195_s11, 4  ;;  %p1252_p0 = pnand %p800_p13, %p1211_p4  ;;  %s1248_s12 = int_to_ptr.vmem [resolvable:$true] %s205_s12 }
  0x1d   : > { %s192_s14 = scalar_lea.sflag [#allocation5], %s1239_s5 }
  0x1e   : > { %p898_p3 = pneg %p1252_p0 }
  0x21   : > { %s1246_s10 = scalar_lea.hbm %s1561_s0, %s753_s7  ;;  %s901_s25 = scalar_lea.hbm %s1561_s0, 1024 }
  0x22   : > { %s896_s24 = scalar_lea.hbm %s1246_s10, 512  ;;  %p902_p4 = scmp.lt.u32.totalorder %s1246_s10, %s1561_s0 }
  0x23   : > { %p897_p2 = scmp.ne.s32.totalorder %s1246_s10, %s896_s24  ;;  %p903_p7 = scmp.lt.u32.totalorder %s901_s25, %s896_s24 }
  0x24   : > { %p905_p13 = scmp.lt.u32.totalorder %s896_s24, %s1246_s10 }
  0x25   : > { %p899_p5 = pnand %p898_p3, %p897_p2  ;;  %p904_p10 = por %p903_p7, %p902_p4 }
  0x27   : > { %p900_p6 = pneg %p899_p5  ;;  %p906_p12 = por %p905_p13, %p904_p10 }
  0x29   : > { %p907_p1 = pnand %p906_p12, %p900_p6 }
  0x2b   : > { %910 = shalt.err (!%p907_p1)
}
  0x2c   : > { %s911_s9 = scalar_lea.vmem %s1248_s12, 512  ;;  %s1128_s11 = smov [#allocation4]  }
  0x2d   : > { %p912_p2 = scmp.ne.s32.totalorder %s1248_s12, %s911_s9  ;;  %s916_s26 = sshll.u32 %s1128_s11, 4  ;;  %s917_s26 = int_to_ptr.vmem [resolvable:$false] %s916_s26 }
  0x2e   : > { %s918_s6 = scalar_lea.vmem %s917_s26, 1024  ;;  %p919_p9 = scmp.lt.s32.totalorder %s1248_s12, %s917_s26 }
  0x2f   : > { %p914_p5 = pnand %p912_p2, %p898_p3  ;;  %p920_p4 = scmp.lt.s32.totalorder %s918_s6, %s911_s9 }
  0x31   : > { %p915_p11 = pneg %p914_p5  ;;  %p921_p7 = por %p920_p4, %p919_p9 }
  0x33   : > { %p922_p10 = pnand %p921_p7, %p915_p11 }
  0x35   : > { %925 = shalt.err (!%p922_p10)
}
  0x36   : > { %s1129_s24 = smov 64   ;;  %s1130_s25 = smov 4  }
  0x37   : > { %786 = dma.hbm_to_vmem [thread:$0]  (!%p1252_p0), %s1246_s10, 512, %s1248_s12, %s192_s14, %s1129_s24, %s1129_s24, %s1130_s25  }
  0x38   : > { %p234_p12 = scmp.lt.s32.totalorder %s1114_s20, 3  ;;  %s730_s7 = sshll.u32 %s1239_s5, 7 }
  0x39   : > { %s754_s8 = sshll.u32 %s1110_s19, 11  ;;  %p1563_p9 = scmp.ge.s32.totalorder %s1114_s20, 1 }
  0x3a   : > { %s1297_s6 = scalar_lea.hbm %s1549_s1, %s754_s8  ;;  %s219_s22 = scalar_lea.vmem [#allocation7], %s730_s7 }
  0x3b   : > { %p1290_p11 = pnand %p1563_p9, %p234_p12  ;;  %s226_s0 = sshll.u32 %s219_s22, 4  ;;  %s1299_s0 = int_to_ptr.vmem [resolvable:$true] %s226_s0 }
  0x3c   : > { %s216_s10 = scalar_lea.sflag [#allocation8], %s1239_s5  ;;  %s926_s12 = scalar_lea.hbm %s1297_s6, 2048 }
  0x3d   : > { %p927_p1 = scmp.ne.s32.totalorder %s1297_s6, %s926_s12  ;;  %s931_s25 = scalar_lea.hbm %s1549_s1, 4096 }
  0x3e   : > { %p932_p2 = scmp.lt.u32.totalorder %s1297_s6, %s1549_s1  ;;  %p933_p5 = scmp.lt.u32.totalorder %s931_s25, %s926_s12 }
  0x3f   : > { %p929_p6 = pnand %p927_p1, %p898_p3  ;;  %p935_p7 = scmp.lt.u32.totalorder %s926_s12, %s1297_s6 }
  0x40   : > { %p934_p4 = por %p933_p5, %p932_p2 }
  0x41   : > { %p930_p13 = pneg %p929_p6 }
  0x42   : > { %p936_p10 = por %p935_p7, %p934_p4 }
  0x44   : > { %p937_p12 = pnand %p936_p10, %p930_p13 }
  0x46   : > { %940 = shalt.err (!%p937_p12)
}
  0x47   : > { %s941_s22 = scalar_lea.vmem %s1299_s0, 2048  ;;  %s1131_s7 = smov [#allocation7]  }
  0x48   : > { %p942_p9 = scmp.ne.s32.totalorder %s1299_s0, %s941_s22  ;;  %s946_s26 = sshll.u32 %s1131_s7, 4  ;;  %s947_s26 = int_to_ptr.vmem [resolvable:$false] %s946_s26 }
  0x49   : > { %s948_s14 = scalar_lea.vmem %s947_s26, 4096  ;;  %p949_p8 = scmp.lt.s32.totalorder %s1299_s0, %s947_s26 }
  0x4a   : > { %p944_p1 = pnand %p942_p9, %p898_p3  ;;  %p950_p2 = scmp.lt.s32.totalorder %s948_s14, %s941_s22 }
  0x4c   : > { %p945_p6 = pneg %p944_p1  ;;  %p951_p5 = por %p950_p2, %p949_p8 }
  0x4e   : > { %p952_p4 = pnand %p951_p5, %p945_p6 }
  0x50   : > { %955 = shalt.err (!%p952_p4)
}
  0x51   : > { %s1132_s12 = smov 256   ;;  %s1133_s24 = smov 16  }
  0x52   : > { %789 = dma.hbm_to_vmem [thread:$0]  (!%p1252_p0), %s1297_s6, 2048, %s1299_s0, %s216_s10, %s1132_s12, %s1132_s12, %s1133_s24  }
  0x53   : > { %238 = sbr.rel (%p1290_p11) target bundleno = 682 (0x2aa), region = 28  ;;  %s1330_s25 = sand.u32 (!%p1290_p11), 1, %s1098_s16  }
  0x54   : > { %s734_s8 = sshll.u32 (!%p1290_p11), %s1330_s25, 5  ;;  %s241_s11 = scalar_lea.sflag (!%p1290_p11), [#allocation5], %s1330_s25 }
  0x55   : > { %s1334_s22 = scalar_lea.vmem (!%p1290_p11), [#allocation4], %s734_s8  ;;  %p1565_p8 = scmp.ne.s32.totalorder (!%p1290_p11), %s1558_s27, 0 }
  0x5a   : > { %1077 = dma.done.wait (%p1565_p8), %s241_s11, 512  }
  0x5b   : > { %1079 = vsyncadd (%p1565_p8), %s241_s11, 4294966784  ;;  %s735_s0 = sshll.u32 %s1330_s25, 7  ;;  %s250_s5 = scalar_lea.sflag [#allocation8], %s1330_s25 }
  0x5c   : > { %s253_s13 = scalar_lea.vmem [#allocation7], %s735_s0 }
  0x5d   : > { %1081 = dma.done.wait (%p1565_p8), %s250_s5, 2048  }
  0x5e   : > { %1083 = vsyncadd (%p1565_p8), %s250_s5, 4294965248  ;;  %s736_s9 = sshll.u32 %s1330_s25, 4  ;;  %s737_s6 = sshll.u32 %s1330_s25, 1  ;;  %vm299_vm0 = vcmask 517120   ;;  %v1134_v0 = vmov 0.0   ;;  %v1350_v1 = vld [vmem:[%s253_s13] sm:$0xff] }
  0x5f   : > { %300 = vst.msk [vmem:[#allocation2] sm:$0x3] %vm299_vm0, %v1134_v0  ;;  %301 = vst.msk [vmem:[#allocation3] sm:$0x3] %vm299_vm0, %v1134_v0  ;;  %v1352_v2 = vld [vmem:[%s253_s13 + $0x8] sm:$0xff]  ;;  %v1354_v3 = vld [vmem:[%s253_s13 + $0x10] sm:$0xff] }
  0x60   : > { %v1356_v4 = vld [vmem:[%s253_s13 + $0x18] sm:$0xff]  ;;  %v1358_v5 = vld [vmem:[%s253_s13 + $0x20] sm:$0xff]  ;;  %v1360_v6 = vld [vmem:[%s253_s13 + $0x28] sm:$0xff]  ;;  %s1382_s27 = scalar_lea.vmem [#allocation9], %s736_s9  ;;  %s1384_s10 = scalar_lea.vmem [#allocation10], %s737_s6 }
  0x61   : > { %v1362_v7 = vld [vmem:[%s253_s13 + $0x30] sm:$0xff]  ;;  %v1364_v8 = vld [vmem:[%s253_s13 + $0x38] sm:$0xff]  ;;  %v1366_v9 = vld [vmem:[%s253_s13 + $0x40] sm:$0xff]  ;;  %s1386_s7 = scalar_lea.vmem [#allocation12], %s737_s6  ;;  %s1392_s26 = smov 0  }
  0x62   : > { %v1368_v10 = vld [vmem:[%s253_s13 + $0x48] sm:$0xff]  ;;  %v1370_v11 = vld [vmem:[%s253_s13 + $0x50] sm:$0xff]  ;;  %v1372_v12 = vld [vmem:[%s253_s13 + $0x58] sm:$0xff] }
  0x63   : > { %v1374_v13 = vld [vmem:[%s253_s13 + $0x60] sm:$0xff]  ;;  %v1376_v14 = vld [vmem:[%s253_s13 + $0x68] sm:$0xff]  ;;  %v1378_v15 = vld [vmem:[%s253_s13 + $0x70] sm:$0xff] }
  0x64   : > { %v1380_v16 = vld [vmem:[%s253_s13 + $0x78] sm:$0xff] }
  0x66   : > { %v318_v17 = vld [vmem:[#allocation2] sm:$0x3]   ;;  %v319_v18 = vld [vmem:[#allocation3] sm:$0x3]  }
  0x67 LB: >> { %v757_v19 = vpack.c.bf16 %v1356_v4, %v1352_v2  ;;  %v759_v20 = vpack.c.bf16 %v1354_v3, %v1350_v1  ;;  %v761_v21 = vpack.c.bf16 %v1364_v8, %v1360_v6  ;;  %v763_v22 = vpack.c.bf16 %v1362_v7, %v1358_v5  ;;  %s1137_s14 = smov 64   ;;  %s755_s12 = sshll.u32 %s1126_s26, 2  ;;  %s1126_s26 = sphi %s1392_s26, %s325_s26   ;;  %v1122_v17 = vphi %v318_v17, %v1567_v17   ;;  %v1118_v18 = vphi %v319_v18, %v1566_v18  }
  0x68   : >> { %v1135_v23 = vmov 0.0   ;;  %v413_v24 = vlaneseq  ;;  %v765_v25 = vpack.c.bf16 %v1372_v12, %v1368_v10  ;;  %v1136_v26 = vmov 1983009808   ;;  %s330_s24 = scalar_lea.vmem %s1334_s22, %s755_s12 [#allocation4]  ;;  %s739_s8 = sshll.u32 %s1126_s26, 1 }
  0x69   : >> { %758 = vmatprep.subr.bf16.mxu0 %v757_v19  ;;  %400 = vmatprep.mubr.f32.mxu0 %v1135_v23  ;;  %v411_v27 = vunpack.c.l.s4 %v1136_v26  ;;  %v767_v30 = vpack.c.bf16 %v1370_v11, %v1366_v9  ;;  %v769_v31 = vpack.c.bf16 %v1380_v16, %v1376_v14  ;;  %v771_v34 = vpack.c.bf16 %v1378_v15, %v1374_v13  ;;  %v331_v38 = vld [vmem:[%s330_s24] sm:$0xf]  ;;  %s463_s11 = scalar_lea.vmem %s1382_s27, %s739_s8 [#allocation9]  ;;  %s325_s26 = sadd.s32 1, %s1126_s26  }
  0x6a   : >> { %760 = vmatpush1.bf16.msra.mxu0 %v759_v20  ;;  %v414_v28 = vshrl.u32 %v413_v24, 7  ;;  %vm332_vm1 = vcmask 523264   ;;  %p322_p0 = scmp.ge.s32.totalorder %s325_s26, 8  }
  0x6b   : >> { %762 = vmatprep.subr.bf16.mxu0 %v761_v21  ;;  %v412_v29 = vunpack.c.0.s8 %v411_v27  ;;  %s490_s0 = sand.u32 (%p322_p0), 1, %s1199_s21   ;;  %s749_s5 = sshll.u32 (%p322_p0), %s1106_s18, 5 }
  0x6c   : > { %s1443_s6 = scalar_lea.hbm (%p322_p0), %s1551_s3, %s749_s5  ;;  %s527_s22 = sshll.u32 (%p322_p0), %s1384_s10, 4  ;;  %s528_s22 = int_to_ptr.vmem [resolvable:$true] %s527_s22 }
  0x6d   : >> { %v415_v32 = vsub.s32 %v412_v29, %v414_v28  ;;  %s1449_s12 = scalar_lea.hbm (%p322_p0), %s1552_s4, %s749_s5  ;;  %s1451_s24 = scalar_lea.sflag (%p322_p0), [#allocation11], %s490_s0 }
  0x6e   : >> { %764 = vmatpush1.bf16.msra.mxu0 %v763_v22  ;;  %s956_s21 = scalar_lea.vmem (%p322_p0), %s528_s22, 32  ;;  %p1568_p11 = scmp.ne.s32.totalorder (%p322_p0), %s1559_s28, 0 }
  0x6f   : >> { %766 = vmatprep.subr.bf16.mxu0 %v765_v25  ;;  %v446_v33 = vrot.slane %v1118_v18, %v415_v32  ;;  %p957_p3 = scmp.ne.s32.totalorder (%p322_p0), %s528_s22, %s956_s21  ;;  %s1138_s8 = smov (%p322_p0), [#allocation10]  }
  0x71   : >> { %447 = vrot.lane.b32.xlu0 %v446_v33, %s1137_s14  ;;  %p958_p13 = pnand (%p322_p0), %p957_p3, %p1568_p11 }
  0x72   : >> { %768 = vmatpush1.bf16.msra.mxu0 %v767_v30 }
  0x73   : >> { %770 = vmatprep.subr.bf16.mxu0 %v769_v31  ;;  %p959_p7 = pneg (%p322_p0), %p958_p13 }
  0x76   : >> { %772 = vmatpush1.bf16.msra.mxu0 %v771_v34 }
  0x79   : >> { %741 = vmatmul.mubr.msk.f32.vlgmr.msra.gmra.mrb[0].mxu0 %vm332_vm1, %v1122_v17 }
  0xe3   : >> { %v448_v48 = vpop.permute.xlu0 %447 }
 0x14c   : >> { %v402_v35 = vpop.f32.mrb[0].mxu0 }
 0x14d   : >> { %v404_v36 = vpop.f32.mrb[1].mxu0 }
 0x14e   : >> { %v409_v37 = vcombine.low %v402_v35, %v404_v36 }
 0x150   : >> { %v416_v39 = vrot.slane %v409_v37, %v415_v32 }
 0x152   : >> { %v418_v40 = vadd.f32 %v416_v39, %v331_v38 }
 0x154   : >> { %429 = vrot.lane.b32.xlu1 %v418_v40, %s1137_s14  ;;  %v742_v41 = vmul.f32 -1.442695, %v418_v40  ;;  %v426_v42 = vrot.slane %v418_v40, 2 }
 0x156   : >> { %884 = vpow2.f32 %v742_v41 }
 0x157   : >> { %886 = vtanh.f32 %v426_v42 }
 0x160   : >> { %v885_v43 = vpop.eup %884 }
 0x161   : >> { %v422_v44 = vadd.f32 1.0, %v885_v43  ;;  %v887_v45 = vpop.eup %886 }
 0x163   : >> { %888 = vrcp.f32 %v422_v44 }
 0x16d   : >> { %v889_v46 = vpop.eup %888 }
 0x16e   : >> { %v451_v47 = vmul.f32 %v889_v46, %v887_v45  ;;  %v450_v49 = vmul.f32 %v889_v46, %v448_v48 }
 0x170   : >> { %453 = vrot.lane.b32.xlu0 %v451_v47, %s1137_s14 }
 0x1c6   : >> { %v430_v54 = vpop.permute.xlu1 %429 }
 0x1c7   : >> { %v431_v55 = vrot.slane %v430_v54, 2 }
 0x1c9   : >> { %v743_v56 = vmul.f32 -1.442695, %v431_v55 }
 0x1e2   : >> { %v454_v50 = vpop.permute.xlu0 %453 }
 0x1e3   : >> { %v456_v51 = vadd.f32 %v454_v50, %v450_v49 }
 0x1e5   : >> { %890 = vtanh.f32 %v456_v51  ;;  %v473_v52 = vrot.slane %v456_v51, %v415_v32 }
 0x1e6   : >> { %892 = vpow2.f32 %v743_v56 }
 0x1e7   : >> { %474 = vrot.lane.b32.xlu0 %v473_v52, %s1137_s14 }
 0x1ef   : >> { %v891_v53 = vpop.eup %890 }
 0x1f0   : >> { %459 = vrot.lane.b32.xlu1 %v891_v53, %s1137_s14  ;;  %v893_v57 = vpop.eup %892 }
 0x1f1   : >> { %v436_v58 = vadd.f32 1.0, %v893_v57 }
 0x1f3   : >> { %894 = vrcp.f32 %v436_v58 }
 0x1fd   : >> { %v895_v60 = vpop.eup %894 }
 0x259   : >> { %v475_v59 = vpop.permute.xlu0 %474  }
 0x25a   : >> { %v1566_v18 = vmov %v475_v59  ;;  %484 = vst.msk [vmem:[%s1386_s7] sm:$0x3] (%p322_p0), %vm299_vm0, %v475_v59  ;;  %479 = vst.msk [vmem:[#allocation3] sm:$0x3] (%p322_p0), %vm299_vm0, %v475_v59 }
 0x25f   : > { %324 = sbr.rel (!%p322_p0) target bundleno = 103 (0x67), region = 135 }
 0x262   : >> { %v460_v61 = vpop.permute.xlu1 %459 }
 0x263   : >> { %v462_v62 = vmul.f32 %v895_v60, %v460_v61  }
 0x265   : >> { %465 = vst.msk [vmem:[%s463_s11] sm:$0x3] %vm299_vm0, %v462_v62  ;;  %v1567_v17 = vmov %v462_v62  ;;  %483 = vst.msk [vmem:[%s1384_s10] sm:$0x3] (%p322_p0), %vm299_vm0, %v462_v62  ;;  %s960_s11 = sshll.u32 (%p322_p0), %s1138_s8, 4  ;;  %s961_s11 = int_to_ptr.vmem [resolvable:$false] %s960_s11 }
 0x266   : > { %478 = vst.msk [vmem:[#allocation2] sm:$0x3] %vm299_vm0, %v462_v62  ;;  %s962_s13 = scalar_lea.vmem %s961_s11, 64  ;;  %p963_p10 = scmp.lt.s32.totalorder %s528_s22, %s961_s11 }
 0x267   : > { %p964_p12 = scmp.lt.s32.totalorder %s962_s13, %s956_s21 }
 0x269   : > { %p965_p9 = por %p964_p12, %p963_p10 }
 0x26b   : > { %p966_p1 = pnand %p965_p9, %p959_p7 }
 0x26d   : > { %969 = shalt.err (!%p966_p1)
}
 0x26e   : > { %s970_s10 = scalar_lea.hbm %s1443_s6, 32  ;;  %s974_s9 = scalar_lea.hbm %s1551_s3, 64 }
 0x26f   : > { %p971_p6 = scmp.ne.s32.totalorder %s1443_s6, %s970_s10  ;;  %p975_p4 = scmp.lt.u32.totalorder %s1443_s6, %s1551_s3 }
 0x270   : > { %p976_p8 = scmp.lt.u32.totalorder %s974_s9, %s970_s10  ;;  %p978_p3 = scmp.lt.u32.totalorder %s970_s10, %s1443_s6 }
 0x271   : > { %p972_p2 = pnand %p971_p6, %p1568_p11 }
 0x272   : > { %p977_p0 = por %p976_p8, %p975_p4 }
 0x273   : > { %p973_p5 = pneg %p972_p2 }
 0x274   : > { %p979_p13 = por %p978_p3, %p977_p0 }
 0x276   : > { %p980_p7 = pnand %p979_p13, %p973_p5 }
 0x278   : > { %983 = shalt.err (!%p980_p7)
}
 0x279   : > { %778 = dma.vmem_to_hbm [thread:$0]  (%p1568_p11), %s528_s22, 32, %s1443_s6, %s1451_s24  }
 0x27a   : > { %s756_s21 = sshll.u32 %s1106_s18, 8  ;;  %s511_s8 = sshll.u32 %s1382_s27, 4  ;;  %s1478_s8 = int_to_ptr.vmem [resolvable:$true] %s511_s8 }
 0x27b   : > { %s1476_s0 = scalar_lea.hbm %s1550_s2, %s756_s21  ;;  %s486_s10 = scalar_lea.sflag [#allocation6], %s1330_s25 }
 0x27c   : > { %s984_s5 = scalar_lea.vmem %s1478_s8, 256  ;;  %s1139_s9 = smov [#allocation9]  }
 0x27d   : > { %p985_p10 = scmp.ne.s32.totalorder %s1478_s8, %s984_s5  ;;  %s988_s6 = sshll.u32 %s1139_s9, 4  ;;  %s989_s6 = int_to_ptr.vmem [resolvable:$false] %s988_s6 }
 0x27e   : > { %s990_s18 = scalar_lea.vmem %s989_s6, 512  ;;  %p991_p1 = scmp.lt.s32.totalorder %s1478_s8, %s989_s6 }
 0x27f   : > { %p986_p12 = pnand %p985_p10, %p1568_p11  ;;  %p992_p6 = scmp.lt.s32.totalorder %s990_s18, %s984_s5 }
 0x281   : > { %p987_p9 = pneg %p986_p12  ;;  %p993_p2 = por %p992_p6, %p991_p1 }
 0x283   : > { %p994_p5 = pnand %p993_p2, %p987_p9 }
 0x285   : > { %997 = shalt.err (!%p994_p5)
}
 0x286   : > { %s998_s27 = scalar_lea.hbm %s1476_s0, 256  ;;  %s1002_s14 = scalar_lea.hbm %s1550_s2, 512 }
 0x287   : > { %p999_p4 = scmp.ne.s32.totalorder %s1476_s0, %s998_s27  ;;  %p1003_p3 = scmp.lt.u32.totalorder %s1476_s0, %s1550_s2 }
 0x288   : > { %p1004_p13 = scmp.lt.u32.totalorder %s1002_s14, %s998_s27  ;;  %p1006_p10 = scmp.lt.u32.totalorder %s998_s27, %s1476_s0 }
 0x289   : > { %p1000_p8 = pnand %p999_p4, %p1568_p11 }
 0x28a   : > { %p1005_p7 = por %p1004_p13, %p1003_p3 }
 0x28b   : > { %p1001_p0 = pneg %p1000_p8 }
 0x28c   : > { %p1007_p12 = por %p1006_p10, %p1005_p7 }
 0x28e   : > { %p1008_p9 = pnand %p1007_p12, %p1001_p0 }
 0x290   : > { %1011 = shalt.err (!%p1008_p9)
}
 0x291   : > { %s1140_s13 = smov 32   ;;  %s1141_s5 = smov 2  }
 0x292   : > { %777 = dma.vmem_to_hbm [thread:$0]  (%p1568_p11), %s1478_s8, 256, %s1476_s0, %s486_s10, %s1140_s13, %s1140_s13, %s1141_s5  }
 0x293   : > { %s540_s9 = sshll.u32 %s1386_s7, 4  ;;  %s1142_s18 = smov [#allocation12]   ;;  %s541_s9 = int_to_ptr.vmem [resolvable:$true] %s540_s9 }
 0x294   : > { %s1012_s6 = scalar_lea.vmem %s541_s9, 32  ;;  %s1016_s27 = sshll.u32 %s1142_s18, 4  ;;  %s1017_s27 = int_to_ptr.vmem [resolvable:$false] %s1016_s27 }
 0x295   : > { %p1013_p1 = scmp.ne.s32.totalorder %s541_s9, %s1012_s6  ;;  %s1018_s22 = scalar_lea.vmem %s1017_s27, 64 }
 0x296   : > { %p1019_p5 = scmp.lt.s32.totalorder %s541_s9, %s1017_s27  ;;  %p1020_p4 = scmp.lt.s32.totalorder %s1018_s22, %s1012_s6 }
 0x297   : > { %p1014_p6 = pnand %p1013_p1, %p1568_p11 }
 0x298   : > { %p1021_p8 = por %p1020_p4, %p1019_p5 }
 0x299   : > { %p1015_p2 = pneg %p1014_p6 }
 0x29b   : > { %p1022_p0 = pnand %p1021_p8, %p1015_p2 }
 0x29d   : > { %1025 = shalt.err (!%p1022_p0)
}
 0x29e   : > { %s1026_s25 = scalar_lea.hbm %s1449_s12, 32  ;;  %s1030_s0 = scalar_lea.hbm %s1552_s4, 64 }
 0x29f   : > { %p1027_p3 = scmp.ne.s32.totalorder %s1449_s12, %s1026_s25  ;;  %p1031_p10 = scmp.lt.u32.totalorder %s1449_s12, %s1552_s4 }
 0x2a0   : > { %p1032_p12 = scmp.lt.u32.totalorder %s1030_s0, %s1026_s25  ;;  %p1034_p1 = scmp.lt.u32.totalorder %s1026_s25, %s1449_s12 }
 0x2a1   : > { %p1028_p13 = pnand %p1027_p3, %p1568_p11 }
 0x2a2   : > { %p1033_p9 = por %p1032_p12, %p1031_p10 }
 0x2a3   : > { %p1029_p7 = pneg %p1028_p13 }
 0x2a4   : > { %p1035_p6 = por %p1034_p1, %p1033_p9 }
 0x2a6   : > { %p1036_p2 = pnand %p1035_p6, %p1029_p7 }
 0x2a8   : > { %1039 = shalt.err (!%p1036_p2)
}
 0x2a9   : > { %779 = dma.vmem_to_hbm [thread:$0]  (%p1568_p11), %s541_s9, 32, %s1449_s12, %s1451_s24  }
 0x2aa PF: > { %s552_s14 = sand.u32 1, %s1094_s15   ;;  %p1569_p5 = scmp.ne.s32.totalorder %s1560_s30, 0 }
 0x2ab   : > { %p1570_p4 = scmp.ge.s32.totalorder %s1114_s20, 2  ;;  %s553_s21 = scalar_lea.sflag [#allocation6], %s552_s14 }
 0x2ad   : > { %p791_p8 = pnand %p1570_p4, %p1569_p5 }
 0x2af   : > { %1085 = dma.done.wait (!%p791_p8), %s553_s21, 256  }
 0x2b0   : > { %1087 = vsyncadd (!%p791_p8), %s553_s21, 4294967040  ;;  %s1571_s11 = sadd.s32 4294967294, %s1114_s20  }
 0x2b1   : > { %s561_s13 = sand.u32 1, %s1571_s11  }
 0x2b2   : > { %s562_s5 = scalar_lea.sflag [#allocation11], %s561_s13 }
 0x2b3   : > { %1089 = dma.done.wait (!%p791_p8), %s562_s5, 64  }
 0x2b4   : > { %1091 = vsyncadd (!%p791_p8), %s562_s5, 4294967232  ;;  %s27_s20 = sadd.s32 1, %s1114_s20   ;;  %s1572_s15 = smov %s1098_s16 }
 0x2b5   : > { %p24_p11 = scmp.ge.s32.totalorder %s27_s20, 4   ;;  %s1573_s16 = smov %s1102_s17 }
 0x2b6   : > { %s1574_s17 = smov %s1230_s29  ;;  %s1575_s18 = smov %s1110_s19 }
 0x2b7   : > { %s1576_s19 = smov %s1578_s23  ;;  %26 = sbr.rel (!%p24_p11) target bundleno = 12 (0xc), region = 146 }
 0x2be   :  { %576 = vsyncpa [#allocation5], 1 }
 0x2bf   :  { %578 = vsyncpa [#allocation5 + $0x1], 1 }
 0x2c0   :  { %579 = vsyncpa [#allocation8], 1 }
 0x2c1   :  { %581 = vsyncpa [#allocation8 + $0x1], 1 }
 0x2c2   :  { %582 = vsyncpa [#allocation6], 1 }
 0x2c3   :  { %584 = vsyncpa [#allocation6 + $0x1], 1 }
 0x2c4   :  { %585 = vsyncpa [#allocation11], 1 }
 0x2c5   :  { %587 = vsyncpa [#allocation11 + $0x1], 1 }

// kernel: encoder_forward.5
= control target key start
LH: loop header
LB: loop body
LE: loop exit
PB: predicated region body
PF: predicated region fallthrough
CT: control target
= control target key end

     0   :  { %s1464_s0 = inlined_call_operand.hbm [shape: f32[2,8,2,128], index: 0, kind: input, shape index: {}]   ;;  %s1465_s1 = inlined_call_operand.hbm [shape: f32[2,32,128], index: 1, kind: input, shape index: {}]   ;;  %s1466_s2 = inlined_call_operand.hbm [shape: f32[2,8,2,32], index: 2, kind: output, shape index: {0}]   ;;  %s1467_s3 = inlined_call_operand.hbm [shape: f32[2,2,32], index: 3, kind: output, shape index: {1}]   ;;  %s1468_s4 = inlined_call_operand.hbm [shape: f32[2,2,32], index: 4, kind: output, shape index: {2}]  }
   0x1   :  { %1472 = sst [smem:[#allocation17_spill]] %s1464_s0 }
   0x2   :  { %10 = vsyncpa [#allocation5], 0 }
   0x3   :  { %12 = vsyncpa [#allocation5 + $0x1], 0 }
   0x4   :  { %13 = vsyncpa [#allocation8], 0 }
   0x5   :  { %15 = vsyncpa [#allocation8 + $0x1], 0 }
   0x6   :  { %16 = vsyncpa [#allocation6], 0 }
   0x7   :  { %18 = vsyncpa [#allocation6 + $0x1], 0 }
   0x8   :  { %19 = vsyncpa [#allocation11], 0 }
   0x9   :  { %21 = vsyncpa [#allocation11 + $0x1], 0  ;;  %s1128_s15 = smov 0   ;;  %s1130_s16 = smov 0  }
   0xa   :  { %s1132_s17 = smov 0   ;;  %s1134_s18 = smov 0  }
   0xb   :  { %s1136_s19 = smov 0   ;;  %s1138_s20 = smov 0  }
   0xc LB: > { %s1159_s21 = sadd.s32 4294967295, %s1071_s20   ;;  %s1470_s22 = sadd.s32 4294967294, %s1071_s20   ;;  %s1071_s20 = sphi %s1138_s20, %s27_s20   ;;  %s1067_s19 = sphi %s1136_s19, %s1491_s19   ;;  %s1063_s18 = sphi %s1134_s18, %s1490_s18   ;;  %s1059_s17 = sphi %s1132_s17, %s1489_s17   ;;  %s1055_s16 = sphi %s1130_s16, %s1488_s16   ;;  %s1051_s15 = sphi %s1128_s15, %s1487_s15  }
   0xd   : > { %s39_s23 = sadd.s32 1, %s1067_s19  ;;  %s48_s24 = sadd.s32 1, %s1059_s17 }
   0xe   : > { %p41_p0 = scmp.ge.s32.totalorder %s39_s23, 2  ;;  %p55_p1 = scmp.ne.s32.totalorder %s1059_s17, %s1055_s16 }
   0xf   : > { %p56_p2 = scmp.eq.s32.totalorder %s1071_s20, 0  ;;  %p61_p3 = scmp.ne.s32.totalorder %s1055_s16, %s1051_s15 }
  0x10   : > { %s1493_s23 = smov (%p41_p0, %s39_s23), 0  ;;  %p62_p5 = scmp.eq.s32.totalorder %s1159_s21, 0 }
  0x11   : > { %p1171_p4 = por %p56_p2, %p55_p1  ;;  %s43_s26 = ssub.s32 %s1067_s19, %s1493_s23 }
  0x12   : > { %p113_p6 = scmp.eq.s32.totalorder %s1159_s21, 1  ;;  %p46_p7 = scmp.eq.s32.totalorder %s43_s26, 0 }
  0x13   : > { %p1179_p8 = por %p62_p5, %p61_p3  ;;  %p119_p10 = scmp.eq.s32.totalorder %s1470_s22, 1 }
  0x14   : > { %p1183_p9 = por %p113_p6, %p55_p1  ;;  %p758_p13 = scmp.lt.s32.totalorder %s1071_s20, 2 }
  0x15   : > { %s1474_s27 = scalar_select %p1179_p8, 1, 0 }
  0x16   : > { %s1475_s28 = scalar_select %p1183_p9, 1, 0 }
  0x17   : > { %s1190_s29 = scalar_select %p46_p7, %s1059_s17, %s48_s24  }
  0x18   : > { %p1192_p11 = por %p119_p10, %p61_p3  ;;  %s1199_s5 = sand.u32 1, %s1059_s17  }
  0x19   : > { %s682_s6 = sshll.u32 %s1199_s5, 4  ;;  %s706_s7 = sshll.u32 %s1067_s19, 8 }
  0x1a   : > { %s1476_s30 = scalar_select %p1192_p11, 1, 0 }
  0x1b   : > { %s1477_s0 = sld [smem:[#allocation17_spill]]  ;;  %s195_s11 = scalar_lea.vmem [#allocation4], %s682_s6 }
  0x1c   : > { %s204_s12 = sshll.u32 %s195_s11, 4  ;;  %p1212_p0 = pnand %p758_p13, %p1171_p4  ;;  %s1208_s12 = int_to_ptr.vmem [resolvable:$true] %s204_s12 }
  0x1d   : > { %s192_s14 = scalar_lea.sflag [#allocation5], %s1199_s5 }
  0x1e   : > { %p855_p3 = pneg %p1212_p0 }
  0x21   : > { %s1206_s10 = scalar_lea.hbm %s1477_s0, %s706_s7  ;;  %s858_s25 = scalar_lea.hbm %s1477_s0, 512 }
  0x22   : > { %s853_s24 = scalar_lea.hbm %s1206_s10, 256  ;;  %p859_p4 = scmp.lt.u32.totalorder %s1206_s10, %s1477_s0 }
  0x23   : > { %p854_p2 = scmp.ne.s32.totalorder %s1206_s10, %s853_s24  ;;  %p860_p7 = scmp.lt.u32.totalorder %s858_s25, %s853_s24 }
  0x24   : > { %p862_p13 = scmp.lt.u32.totalorder %s853_s24, %s1206_s10 }
  0x25   : > { %p856_p5 = pnand %p855_p3, %p854_p2  ;;  %p861_p10 = por %p860_p7, %p859_p4 }
  0x27   : > { %p857_p6 = pneg %p856_p5  ;;  %p863_p12 = por %p862_p13, %p861_p10 }
  0x29   : > { %p864_p1 = pnand %p863_p12, %p857_p6 }
  0x2b   : > { %867 = shalt.err (!%p864_p1)
}
  0x2c   : > { %s868_s9 = scalar_lea.vmem %s1208_s12, 256  ;;  %s1085_s11 = smov [#allocation4]  }
  0x2d   : > { %p869_p2 = scmp.ne.s32.totalorder %s1208_s12, %s868_s9  ;;  %s873_s26 = sshll.u32 %s1085_s11, 4  ;;  %s874_s26 = int_to_ptr.vmem [resolvable:$false] %s873_s26 }
  0x2e   : > { %s875_s6 = scalar_lea.vmem %s874_s26, 512  ;;  %p876_p9 = scmp.lt.s32.totalorder %s1208_s12, %s874_s26 }
  0x2f   : > { %p871_p5 = pnand %p869_p2, %p855_p3  ;;  %p877_p4 = scmp.lt.s32.totalorder %s875_s6, %s868_s9 }
  0x31   : > { %p872_p11 = pneg %p871_p5  ;;  %p878_p7 = por %p877_p4, %p876_p9 }
  0x33   : > { %p879_p10 = pnand %p878_p7, %p872_p11 }
  0x35   : > { %882 = shalt.err (!%p879_p10)
}
  0x36   : > { %s1086_s24 = smov 32   ;;  %s1087_s25 = smov 2  }
  0x37   : > { %744 = dma.hbm_to_vmem [thread:$0]  (!%p1212_p0), %s1206_s10, 256, %s1208_s12, %s192_s14, %s1086_s24, %s1086_s24, %s1087_s25  }
  0x38   : > { %p233_p12 = scmp.lt.s32.totalorder %s1071_s20, 3  ;;  %s685_s7 = sshll.u32 %s1199_s5, 5 }
  0x39   : > { %s707_s8 = sshll.u32 %s1067_s19, 9  ;;  %p1479_p9 = scmp.ge.s32.totalorder %s1071_s20, 1 }
  0x3a   : > { %s1257_s6 = scalar_lea.hbm %s1465_s1, %s707_s8  ;;  %s218_s22 = scalar_lea.vmem [#allocation7], %s685_s7 }
  0x3b   : > { %p1250_p11 = pnand %p1479_p9, %p233_p12  ;;  %s225_s0 = sshll.u32 %s218_s22, 4  ;;  %s1259_s0 = int_to_ptr.vmem [resolvable:$true] %s225_s0 }
  0x3c   : > { %s215_s10 = scalar_lea.sflag [#allocation8], %s1199_s5  ;;  %s883_s12 = scalar_lea.hbm %s1257_s6, 512 }
  0x3d   : > { %p884_p1 = scmp.ne.s32.totalorder %s1257_s6, %s883_s12  ;;  %s888_s25 = scalar_lea.hbm %s1465_s1, 1024 }
  0x3e   : > { %p889_p2 = scmp.lt.u32.totalorder %s1257_s6, %s1465_s1  ;;  %p890_p5 = scmp.lt.u32.totalorder %s888_s25, %s883_s12 }
  0x3f   : > { %p886_p6 = pnand %p884_p1, %p855_p3  ;;  %p892_p7 = scmp.lt.u32.totalorder %s883_s12, %s1257_s6 }
  0x40   : > { %p891_p4 = por %p890_p5, %p889_p2 }
  0x41   : > { %p887_p13 = pneg %p886_p6 }
  0x42   : > { %p893_p10 = por %p892_p7, %p891_p4 }
  0x44   : > { %p894_p12 = pnand %p893_p10, %p887_p13 }
  0x46   : > { %897 = shalt.err (!%p894_p12)
}
  0x47   : > { %s898_s22 = scalar_lea.vmem %s1259_s0, 512  ;;  %s1088_s7 = smov [#allocation7]  }
  0x48   : > { %p899_p9 = scmp.ne.s32.totalorder %s1259_s0, %s898_s22  ;;  %s903_s26 = sshll.u32 %s1088_s7, 4  ;;  %s904_s26 = int_to_ptr.vmem [resolvable:$false] %s903_s26 }
  0x49   : > { %s905_s14 = scalar_lea.vmem %s904_s26, 1024  ;;  %p906_p8 = scmp.lt.s32.totalorder %s1259_s0, %s904_s26 }
  0x4a   : > { %p901_p1 = pnand %p899_p9, %p855_p3  ;;  %p907_p2 = scmp.lt.s32.totalorder %s905_s14, %s898_s22 }
  0x4c   : > { %p902_p6 = pneg %p901_p1  ;;  %p908_p5 = por %p907_p2, %p906_p8 }
  0x4e   : > { %p909_p4 = pnand %p908_p5, %p902_p6 }
  0x50   : > { %912 = shalt.err (!%p909_p4)
}
  0x51   : > { %s1089_s12 = smov 128   ;;  %s1090_s24 = smov 8  }
  0x52   : > { %747 = dma.hbm_to_vmem [thread:$0]  (!%p1212_p0), %s1257_s6, 512, %s1259_s0, %s215_s10, %s1089_s12, %s1089_s12, %s1090_s24  }
  0x53   : > { %237 = sbr.rel (%p1250_p11) target bundleno = 884 (0x374), region = 28  ;;  %s1290_s25 = sand.u32 (!%p1250_p11), 1, %s1055_s16  }
  0x54   : > { %s689_s8 = sshll.u32 (!%p1250_p11), %s1290_s25, 4  ;;  %s240_s11 = scalar_lea.sflag (!%p1250_p11), [#allocation5], %s1290_s25 }
  0x55   : > { %s1294_s22 = scalar_lea.vmem (!%p1250_p11), [#allocation4], %s689_s8  ;;  %p1481_p8 = scmp.ne.s32.totalorder (!%p1250_p11), %s1474_s27, 0 }
  0x5a   : > { %1034 = dma.done.wait (%p1481_p8), %s240_s11, 256  }
  0x5b   : > { %1036 = vsyncadd (%p1481_p8), %s240_s11, 4294967040  ;;  %s690_s0 = sshll.u32 %s1290_s25, 5  ;;  %s249_s5 = scalar_lea.sflag [#allocation8], %s1290_s25 }
  0x5c   : > { %s252_s13 = scalar_lea.vmem [#allocation7], %s690_s0 }
  0x5d   : > { %1038 = dma.done.wait (%p1481_p8), %s249_s5, 512  }
  0x5e   : > { %1040 = vsyncadd (%p1481_p8), %s249_s5, 4294966784  ;;  %s692_s9 = sshll.u32 %s1290_s25, 1  ;;  %vm298_vm0 = vcmask 254976   ;;  %v1091_v0 = vmov 0.0   ;;  %v1309_v1 = vld [vmem:[%s252_s13] sm:$0xff]  ;;  %v1311_v2 = vld [vmem:[%s252_s13 + $0x8] sm:$0xff] }
  0x5f   : > { %299 = vst.msk [vmem:[#allocation2] sm:$0x3] %vm298_vm0, %v1091_v0  ;;  %300 = vst.msk [vmem:[#allocation3] sm:$0x3] %vm298_vm0, %v1091_v0  ;;  %v1313_v3 = vld [vmem:[%s252_s13 + $0x10] sm:$0xff]  ;;  %v1315_v4 = vld [vmem:[%s252_s13 + $0x18] sm:$0xff] }
  0x60   : > { %s1317_s27 = scalar_lea.vmem [#allocation9], %s689_s8  ;;  %s1319_s6 = scalar_lea.vmem [#allocation10], %s692_s9 }
  0x61   : > { %s1321_s10 = scalar_lea.vmem [#allocation12], %s692_s9  ;;  %s1325_s7 = smov 0  }
  0x66   : > { %v305_v5 = vld [vmem:[#allocation2] sm:$0x3]   ;;  %v306_v6 = vld [vmem:[#allocation3] sm:$0x3]  }
  0x67   : > { %v1077_v7 = vmov %v305_v5  }
  0x68 LB: >> { %v726_v8 = vpack.c.bf16 %v1311_v2, %v1309_v1  ;;  %v1092_v9 = vmov 0.0|0.0   ;;  %v729_v10 = vpack.c.bf16 %v1315_v4, %v1313_v3  ;;  %vm1093_vm1 = vmmov 0   ;;  %s694_s26 = sshll.u32 %s1083_s7, 1  ;;  %s1095_s12 = smov 64   ;;  %s1083_s7 = sphi %s1325_s7, %s312_s7   ;;  %v1079_v7 = vphi %v1077_v7, %v1078_v7   ;;  %v1075_v6 = vphi %v306_v6, %v1482_v6  }
  0x69   : >> { %725 = vmatprep.subr.bf16.mxu0 %v1092_v9  ;;  %v1094_v11 = vmov 0.0   ;;  %vm318_vm2 = vcmask 261120   ;;  %s316_s14 = scalar_lea.vmem %s1294_s22, %s694_s26 [#allocation4]  ;;  %s1096_s24 = smov 32  }
  0x6a   : >> { %727 = vmatpush3.bf16.msra.mxu0 %v726_v8  ;;  %722 = vmatprep.mubr.msk.f32.mxu0 %vm1093_vm1, %v1094_v11  ;;  %v317_v12 = vld [vmem:[%s316_s14] sm:$0x3]  ;;  %s1097_s8 = smov 96   ;;  %s425_s11 = scalar_lea.vmem %s1317_s27, %s694_s26 [#allocation9] }
  0x6b   : >> { %728 = vmatprep.subr.bf16.mxu0 %v1092_v9  ;;  %s312_s7 = sadd.s32 1, %s1083_s7  }
  0x6c   : >> { %p309_p0 = scmp.ge.s32.totalorder %s312_s7, 8  }
  0x6d   : > { %s445_s0 = sand.u32 (%p309_p0), 1, %s1159_s21   ;;  %s702_s5 = sshll.u32 (%p309_p0), %s1063_s18, 5 }
  0x6e   : >> { %730 = vmatpush3.bf16.msra.mxu0 %v729_v10  ;;  %s1359_s7 = scalar_lea.hbm (%p309_p0), %s1467_s3, %s702_s5  ;;  %s482_s22 = sshll.u32 (%p309_p0), %s1319_s6, 4  ;;  %s483_s22 = int_to_ptr.vmem [resolvable:$true] %s482_s22 }
  0x6f   : > { %s913_s21 = scalar_lea.vmem (%p309_p0), %s483_s22, 32  ;;  %p1483_p11 = scmp.ne.s32.totalorder (%p309_p0), %s1475_s28, 0 }
  0x70   : > { %p914_p3 = scmp.ne.s32.totalorder (%p309_p0), %s483_s22, %s913_s21 }
  0x71   : >> { %723 = vmatmul.mubr.msk.f32.vlgmr.msra.gmra.mrb[0].mxu0 %vm318_vm2, %v1079_v7 }
  0x72   : > { %p915_p13 = pnand (%p309_p0), %p914_p3, %p1483_p11 }
  0x74   : > { %p916_p7 = pneg (%p309_p0), %p915_p13 }
 0x144   : >> { %v388_v13 = vpop.f32.mrb[0].mxu0 }
 0x145   : >> { %v392_v14 = vadd.f32 %v388_v13, %v317_v12  ;;  %v724_v15 = vpop.f32.mrb[1].mxu0 }
 0x147   : >> { %845 = vtanh.f32 %v392_v14  ;;  %v696_v17 = vmul.f32 -1.442695, %v392_v14 }
 0x149   : >> { %847 = vpow2.f32 %v696_v17 }
 0x151   : >> { %v846_v16 = vpop.eup %845 }
 0x152   : >> { %406 = vrot.lane.b32.xlu0 %v846_v16, %s1095_s12 }
 0x153   : >> { %v848_v18 = vpop.eup %847 }
 0x154   : >> { %v396_v19 = vadd.f32 1.0, %v848_v18 }
 0x156   : >> { %401 = vrot.lane.b32.xlu0 %v1075_v6, %s1096_s24  ;;  %849 = vrcp.f32 %v396_v19 }
 0x160   : >> { %v850_v20 = vpop.eup %849 }
 0x1c4   : >> { %v407_v21 = vpop.permute.xlu0 %406 }
 0x1c5   : >> { %v409_v22 = vmul.f32 %v850_v20, %v407_v21 }
 0x1c7   : >> { %411 = vrot.lane.b32.xlu1 %v409_v22, %s1096_s24 }
 0x1c8   : >> { %v402_v23 = vpop.permute.xlu0 %401 }
 0x1c9   : >> { %v404_v24 = vmul.f32 %v850_v20, %v402_v23 }
 0x239   : >> { %v412_v25 = vpop.permute.xlu1 %411 }
 0x23a   : >> { %v414_v26 = vadd.f32 %v412_v25, %v404_v24 }
 0x23c   : >> { %851 = vtanh.f32 %v414_v26 }
 0x246   : >> { %v852_v27 = vpop.eup %851 }
 0x247   : >> { %417 = vrot.lane.b32.xlu1 %v852_v27, %s1095_s12  ;;  %s1365_s12 = scalar_lea.hbm (%p309_p0), %s1468_s4, %s702_s5 }
 0x24b   : >> { %429 = vrot.lane.b32.xlu1 %v414_v26, %s1097_s8  ;;  %s1098_s8 = smov (%p309_p0), [#allocation10]  }
 0x2b9   : >> { %v418_v28 = vpop.permute.xlu1 %417 }
 0x2ba   : >> { %v420_v29 = vmul.f32 %v850_v20, %v418_v28 }
 0x2bc   : >> { %422 = vrot.lane.b32.xlu0 %v420_v29, %s1096_s24  ;;  %s1367_s24 = scalar_lea.sflag (%p309_p0), [#allocation11], %s445_s0 }
 0x2bd   : >> { %v430_v30 = vpop.permute.xlu1 %429  }
 0x2be   : >> { %v1482_v6 = vmov %v430_v30  ;;  %439 = vst.msk [vmem:[%s1321_s10] sm:$0x3] (%p309_p0), %vm298_vm0, %v430_v30  ;;  %434 = vst.msk [vmem:[#allocation3] sm:$0x3] (%p309_p0), %vm298_vm0, %v430_v30 }
 0x329   : > { %311 = sbr.rel (!%p309_p0) target bundleno = 104 (0x68), region = 135 }
 0x32e   : >> { %v423_v31 = vpop.permute.xlu0 %422  }
 0x32f   : >> { %427 = vst.msk [vmem:[%s425_s11] sm:$0x3] %vm298_vm0, %v423_v31  ;;  %v1078_v7 = vmov %v423_v31   ;;  %438 = vst.msk [vmem:[%s1319_s6] sm:$0x3] (%p309_p0), %vm298_vm0, %v423_v31  ;;  %s917_s11 = sshll.u32 (%p309_p0), %s1098_s8, 4  ;;  %s918_s11 = int_to_ptr.vmem [resolvable:$false] %s917_s11 }
 0x330   : > { %433 = vst.msk [vmem:[#allocation2] sm:$0x3] %vm298_vm0, %v423_v31  ;;  %s919_s13 = scalar_lea.vmem %s918_s11, 64  ;;  %p920_p10 = scmp.lt.s32.totalorder %s483_s22, %s918_s11 }
 0x331   : > { %p921_p12 = scmp.lt.s32.totalorder %s919_s13, %s913_s21 }
 0x333   : > { %p922_p9 = por %p921_p12, %p920_p10 }
 0x335   : > { %p923_p1 = pnand %p922_p9, %p916_p7 }
 0x337   : > { %926 = shalt.err (!%p923_p1)
}
 0x338   : > { %s927_s6 = scalar_lea.hbm %s1359_s7, 32  ;;  %s931_s9 = scalar_lea.hbm %s1467_s3, 64 }
 0x339   : > { %p928_p6 = scmp.ne.s32.totalorder %s1359_s7, %s927_s6  ;;  %p932_p4 = scmp.lt.u32.totalorder %s1359_s7, %s1467_s3 }
 0x33a   : > { %p933_p8 = scmp.lt.u32.totalorder %s931_s9, %s927_s6  ;;  %p935_p3 = scmp.lt.u32.totalorder %s927_s6, %s1359_s7 }
 0x33b   : > { %p929_p2 = pnand %p928_p6, %p1483_p11 }
 0x33c   : > { %p934_p0 = por %p933_p8, %p932_p4 }
 0x33d   : > { %p930_p5 = pneg %p929_p2 }
 0x33e   : > { %p936_p13 = por %p935_p3, %p934_p0 }
 0x340   : > { %p937_p7 = pnand %p936_p13, %p930_p5 }
 0x342   : > { %940 = shalt.err (!%p937_p7)
}
 0x343   : > { %736 = dma.vmem_to_hbm [thread:$0]  (%p1483_p11), %s483_s22, 32, %s1359_s7, %s1367_s24  }
 0x344   : > { %s708_s21 = sshll.u32 %s1063_s18, 8  ;;  %s466_s8 = sshll.u32 %s1317_s27, 4  ;;  %s1394_s8 = int_to_ptr.vmem [resolvable:$true] %s466_s8 }
 0x345   : > { %s1392_s0 = scalar_lea.hbm %s1466_s2, %s708_s21  ;;  %s441_s6 = scalar_lea.sflag [#allocation6], %s1290_s25 }
 0x346   : > { %s941_s5 = scalar_lea.vmem %s1394_s8, 256  ;;  %s1099_s9 = smov [#allocation9]  }
 0x347   : > { %p942_p10 = scmp.ne.s32.totalorder %s1394_s8, %s941_s5  ;;  %s945_s7 = sshll.u32 %s1099_s9, 4  ;;  %s946_s7 = int_to_ptr.vmem [resolvable:$false] %s945_s7 }
 0x348   : > { %s947_s18 = scalar_lea.vmem %s946_s7, 512  ;;  %p948_p1 = scmp.lt.s32.totalorder %s1394_s8, %s946_s7 }
 0x349   : > { %p943_p12 = pnand %p942_p10, %p1483_p11  ;;  %p949_p6 = scmp.lt.s32.totalorder %s947_s18, %s941_s5 }
 0x34b   : > { %p944_p9 = pneg %p943_p12  ;;  %p950_p2 = por %p949_p6, %p948_p1 }
 0x34d   : > { %p951_p5 = pnand %p950_p2, %p944_p9 }
 0x34f   : > { %954 = shalt.err (!%p951_p5)
}
 0x350   : > { %s955_s27 = scalar_lea.hbm %s1392_s0, 256  ;;  %s959_s14 = scalar_lea.hbm %s1466_s2, 512 }
 0x351   : > { %p956_p4 = scmp.ne.s32.totalorder %s1392_s0, %s955_s27  ;;  %p960_p3 = scmp.lt.u32.totalorder %s1392_s0, %s1466_s2 }
 0x352   : > { %p961_p13 = scmp.lt.u32.totalorder %s959_s14, %s955_s27  ;;  %p963_p10 = scmp.lt.u32.totalorder %s955_s27, %s1392_s0 }
 0x353   : > { %p957_p8 = pnand %p956_p4, %p1483_p11 }
 0x354   : > { %p962_p7 = por %p961_p13, %p960_p3 }
 0x355   : > { %p958_p0 = pneg %p957_p8 }
 0x356   : > { %p964_p12 = por %p963_p10, %p962_p7 }
 0x358   : > { %p965_p9 = pnand %p964_p12, %p958_p0 }
 0x35a   : > { %968 = shalt.err (!%p965_p9)
}
 0x35b   : > { %s1100_s13 = smov 32   ;;  %s1101_s5 = smov 2  }
 0x35c   : > { %735 = dma.vmem_to_hbm [thread:$0]  (%p1483_p11), %s1394_s8, 256, %s1392_s0, %s441_s6, %s1100_s13, %s1100_s13, %s1101_s5  }
 0x35d   : > { %s495_s9 = sshll.u32 %s1321_s10, 4  ;;  %s1102_s18 = smov [#allocation12]   ;;  %s496_s9 = int_to_ptr.vmem [resolvable:$true] %s495_s9 }
 0x35e   : > { %s969_s7 = scalar_lea.vmem %s496_s9, 32  ;;  %s973_s27 = sshll.u32 %s1102_s18, 4  ;;  %s974_s27 = int_to_ptr.vmem [resolvable:$false] %s973_s27 }
 0x35f   : > { %p970_p1 = scmp.ne.s32.totalorder %s496_s9, %s969_s7  ;;  %s975_s22 = scalar_lea.vmem %s974_s27, 64 }
 0x360   : > { %p976_p5 = scmp.lt.s32.totalorder %s496_s9, %s974_s27  ;;  %p977_p4 = scmp.lt.s32.totalorder %s975_s22, %s969_s7 }
 0x361   : > { %p971_p6 = pnand %p970_p1, %p1483_p11 }
 0x362   : > { %p978_p8 = por %p977_p4, %p976_p5 }
 0x363   : > { %p972_p2 = pneg %p971_p6 }
 0x365   : > { %p979_p0 = pnand %p978_p8, %p972_p2 }
 0x367   : > { %982 = shalt.err (!%p979_p0)
}
 0x368   : > { %s983_s25 = scalar_lea.hbm %s1365_s12, 32  ;;  %s987_s0 = scalar_lea.hbm %s1468_s4, 64 }
 0x369   : > { %p984_p3 = scmp.ne.s32.totalorder %s1365_s12, %s983_s25  ;;  %p988_p10 = scmp.lt.u32.totalorder %s1365_s12, %s1468_s4 }
 0x36a   : > { %p989_p12 = scmp.lt.u32.totalorder %s987_s0, %s983_s25  ;;  %p991_p1 = scmp.lt.u32.totalorder %s983_s25, %s1365_s12 }
 0x36b   : > { %p985_p13 = pnand %p984_p3, %p1483_p11 }
 0x36c   : > { %p990_p9 = por %p989_p12, %p988_p10 }
 0x36d   : > { %p986_p7 = pneg %p985_p13 }
 0x36e   : > { %p992_p6 = por %p991_p1, %p990_p9 }
 0x370   : > { %p993_p2 = pnand %p992_p6, %p986_p7 }
 0x372   : > { %996 = shalt.err (!%p993_p2)
}
 0x373   : > { %737 = dma.vmem_to_hbm [thread:$0]  (%p1483_p11), %s496_s9, 32, %s1365_s12, %s1367_s24  }
 0x374 PF: > { %s507_s14 = sand.u32 1, %s1051_s15   ;;  %p1484_p5 = scmp.ne.s32.totalorder %s1476_s30, 0 }
 0x375   : > { %p1485_p4 = scmp.ge.s32.totalorder %s1071_s20, 2  ;;  %s508_s21 = scalar_lea.sflag [#allocation6], %s507_s14 }
 0x377   : > { %p749_p8 = pnand %p1485_p4, %p1484_p5 }
 0x379   : > { %1042 = dma.done.wait (!%p749_p8), %s508_s21, 256  }
 0x37a   : > { %1044 = vsyncadd (!%p749_p8), %s508_s21, 4294967040  ;;  %s1486_s11 = sadd.s32 4294967294, %s1071_s20  }
 0x37b   : > { %s516_s13 = sand.u32 1, %s1486_s11  }
 0x37c   : > { %s517_s5 = scalar_lea.sflag [#allocation11], %s516_s13 }
 0x37d   : > { %1046 = dma.done.wait (!%p749_p8), %s517_s5, 64  }
 0x37e   : > { %1048 = vsyncadd (!%p749_p8), %s517_s5, 4294967232  ;;  %s27_s20 = sadd.s32 1, %s1071_s20   ;;  %s1487_s15 = smov %s1055_s16 }
 0x37f   : > { %p24_p11 = scmp.ge.s32.totalorder %s27_s20, 4   ;;  %s1488_s16 = smov %s1059_s17 }
 0x380   : > { %s1489_s17 = smov %s1190_s29  ;;  %s1490_s18 = smov %s1067_s19 }
 0x381   : > { %s1491_s19 = smov %s1493_s23  ;;  %26 = sbr.rel (!%p24_p11) target bundleno = 12 (0xc), region = 146 }
 0x388   :  { %531 = vsyncpa [#allocation5], 1 }
 0x389   :  { %533 = vsyncpa [#allocation5 + $0x1], 1 }
 0x38a   :  { %534 = vsyncpa [#allocation8], 1 }
 0x38b   :  { %536 = vsyncpa [#allocation8 + $0x1], 1 }
 0x38c   :  { %537 = vsyncpa [#allocation6], 1 }
 0x38d   :  { %539 = vsyncpa [#allocation6 + $0x1], 1 }
 0x38e   :  { %540 = vsyncpa [#allocation11], 1 }
 0x38f   :  { %542 = vsyncpa [#allocation11 + $0x1], 1 }

</bundles_post_ra>
